<compile_context>
chip_gen: v6e
topology: v6e:2x2x1
jax: 0.10.0
libtpu: 0.0.40
codegen_flags: <defaults>
</compile_context>

<pallas_src>
import functools

import jax
import jax.numpy as jnp
from jax.experimental import pallas as pl
from jax.experimental.pallas import tpu as pltpu

N_OUT = 2     # Linear(H, 2)
N_PAD = 128   # lane-dense output width (one full vreg lane dimension)
TM_MAX = 512  # row tile; multiple of 8, VMEM-safe on v5e/v6e/v7x


def _cls_linear_kernel(x_ref, w_ref, b_ref, o_ref):
    # x_ref: (tm, H)   w_ref: (H, N_PAD)   b_ref: (1, N_PAD)   o_ref: (tm, N_PAD)
    y = jnp.dot(x_ref[...], w_ref[...], preferred_element_type=jnp.float32)
    o_ref[...] = (y + b_ref[...]).astype(o_ref.dtype)


def _cls_linear(x_cls, w_pad, b_pad, *, tm):
    """x_cls: (B, H); w_pad: (H, N_PAD); b_pad: (1, N_PAD) -> (B, N_PAD) f32."""
    B, H = x_cls.shape
    grid = (pl.cdiv(B, tm),)
    return pl.pallas_call(
        _cls_linear_kernel,
        out_shape=jax.ShapeDtypeStruct((B, N_PAD), jnp.float32),
        grid_spec=pltpu.PrefetchScalarGridSpec(
            num_scalar_prefetch=0,
            grid=grid,
            in_specs=[
                pl.BlockSpec((tm, H), lambda i: (i, 0)),       # x rows tiled
                pl.BlockSpec((H, N_PAD), lambda i: (0, 0)),    # full weight, resident
                pl.BlockSpec((1, N_PAD), lambda i: (0, 0)),    # padded bias, resident
            ],
            out_specs=pl.BlockSpec((tm, N_PAD), lambda i: (i, 0)),
        ),
        compiler_params=pltpu.CompilerParams(
            # Row tiles are independent -> shard across both TCs on v7x,
            # neutral on v5e/v6e.
            dimension_semantics=("parallel",),
        ),
    )(x_cls, w_pad, b_pad)


def bert_fine_tune_connection_forward(x, weight, bias):
    """x: (B, S, H); weight: (2, H) (PyTorch layout); bias: (2,) -> (2*B,)."""
    B, S, H = x.shape

    # Slice the CLS token BEFORE the projection (the reference discards all
    # other positions after the matmul anyway).
    x_cls = x[:, 0, :]                                    # (B, H)

    # Keep activations in their input dtype (bf16 flows straight through;
    # MXU accumulates in f32 via preferred_element_type).
    w = jnp.transpose(weight)                             # (H, 2)
    w_pad = jnp.pad(w, ((0, 0), (0, N_PAD - N_OUT))).astype(x_cls.dtype)
    b_pad = jnp.pad(bias.astype(jnp.float32),
                    (0, N_PAD - N_OUT)).reshape(1, N_PAD)

    # Row tile: full B when small (block == full array dim), else a
    # VMEM-friendly multiple of 8.
    tm = B if B <= TM_MAX else TM_MAX

    y_pad = _cls_linear(x_cls, w_pad, b_pad, tm=tm)       # (B, N_PAD) f32

    # self.activity: undefined in the reference module -> identity.
    y = y_pad[:, :N_OUT]                                  # (B, 2)
    return y.reshape(-1)                                  # (2*B,)


if __name__ == "__main__":
    # Small shapes: batch=2, seq=8, bert_hidden_dim=32
    B, S, H = 2, 8, 32

    key = jax.random.PRNGKey(0)
    kx, kw, kb = jax.random.split(key, 3)
    x = jax.random.normal(kx, (B, S, H), dtype=jnp.float32)
    # Deterministic synthetic parameters (nn.Linear(H, 2): weight (2, H), bias (2,))
    weight = jax.random.normal(kw, (2, H), dtype=jnp.float32) * 0.02
    bias = jax.random.normal(kb, (2,), dtype=jnp.float32) * 0.02

    fwd = jax.jit(bert_fine_tune_connection_forward)
    out = jax.block_until_ready(fwd(x, weight, bias))

    # Sanity check against plain-JAX reference (same semantics as the module).
    ref = (x.reshape(B * S, H) @ weight.T + bias).reshape(B, S, 2)[:, 0].reshape(-1)
    assert out.shape == (2 * B,)
    assert jnp.allclose(out, ref, atol=1e-5, rtol=1e-5)

    print("KERNEL_OK")
</pallas_src>

<mosaic_0001>
module attributes {stable_mosaic.version = 11 : i64} {
  func.func @_cls_linear_kernel(%arg0: i32, %arg1: memref<2x32xf32, #tpu.memory_space<vmem>>, %arg2: memref<32x128xf32, #tpu.memory_space<vmem>>, %arg3: memref<1x128xf32, #tpu.memory_space<vmem>>, %arg4: memref<2x128xf32, #tpu.memory_space<vmem>>) attributes {dimension_semantics = [#tpu.dimension_semantics<parallel>], iteration_bounds = array<i64: 1>, scalar_prefetch = 0 : i64, scratch_operands = 0 : i64, tpu.core_type = #tpu.core_type<tc>, window_params = [{transform_indices = @transform_0, window_bounds = array<i64: 2, 32>}, {pipeline_mode = #tpu.pipeline_mode<synchronous>, transform_indices = @transform_1, window_bounds = array<i64: 32, 128>}, {pipeline_mode = #tpu.pipeline_mode<synchronous>, transform_indices = @transform_2, window_bounds = array<i64: 1, 128>}, {transform_indices = @transform_3, window_bounds = array<i64: 2, 128>}]} {
    %c0 = arith.constant 0 : index
    %c0_0 = arith.constant 0 : index
    %0 = vector.load %arg1[%c0, %c0_0] : memref<2x32xf32, #tpu.memory_space<vmem>>, vector<2x32xf32>
    %c0_1 = arith.constant 0 : index
    %c0_2 = arith.constant 0 : index
    %1 = vector.load %arg2[%c0_1, %c0_2] : memref<32x128xf32, #tpu.memory_space<vmem>>, vector<32x128xf32>
    %cst = arith.constant dense<0.000000e+00> : vector<2x128xf32>
    %2 = tpu.matmul %0, %1, %cst {dimension_numbers = #tpu.dot_dimension_numbers<[1], [0], [0], [1], [0, 0, 1, 1], [], []>} : vector<2x32xf32>, vector<32x128xf32>, vector<2x128xf32> -> vector<2x128xf32>
    %c0_3 = arith.constant 0 : index
    %c0_4 = arith.constant 0 : index
    %3 = vector.load %arg3[%c0_3, %c0_4] : memref<1x128xf32, #tpu.memory_space<vmem>>, vector<1x128xf32>
    %4 = vector.broadcast %3 : vector<1x128xf32> to vector<2x128xf32>
    %5 = arith.addf %2, %4 : vector<2x128xf32>
    %c0_5 = arith.constant 0 : index
    %c0_6 = arith.constant 0 : index
    %6 = vector.load %arg4[%c0_5, %c0_6] : memref<2x128xf32, #tpu.memory_space<vmem>>, vector<2x128xf32>
    tpu.vector_store %arg4[%c0_5, %c0_6], %5 {strides = array<i32>} : memref<2x128xf32, #tpu.memory_space<vmem>>, vector<2x128xf32>,
    return
  }
  func.func @transform_0(%arg0: i32) -> (i32, i32) {
    %c0_i32 = arith.constant 0 : i32
    %c0_i32_0 = arith.constant 0 : i32
    return %arg0, %c0_i32 : i32, i32
  }
  func.func @transform_1(%arg0: i32) -> (i32, i32) {
    %c0_i32 = arith.constant 0 : i32
    %c0_i32_0 = arith.constant 0 : i32
    %c0_i32_1 = arith.constant 0 : i32
    return %c0_i32, %c0_i32_0 : i32, i32
  }
  func.func @transform_2(%arg0: i32) -> (i32, i32) {
    %c0_i32 = arith.constant 0 : i32
    %c0_i32_0 = arith.constant 0 : i32
    %c0_i32_1 = arith.constant 0 : i32
    return %c0_i32, %c0_i32_0 : i32, i32
  }
  func.func @transform_3(%arg0: i32) -> (i32, i32) {
    %c0_i32 = arith.constant 0 : i32
    %c0_i32_0 = arith.constant 0 : i32
    return %arg0, %c0_i32 : i32, i32
  }
}

</mosaic_0001>

<bundles_post_ra>
// kernel: bert_fine_tune_connection_forward.1
= control target key start
LH: loop header
LB: loop body
LE: loop exit
PB: predicated region body
PF: predicated region fallthrough
CT: control target
= control target key end

     0   :  { %v125_v0 = vmov 0.0   ;;  %vm126_vm0 = vmmov 0   ;;  %vm26_vm1 = vcmask 261120   ;;  %s168_s1 = inlined_call_operand.vmem [shape: f32[32,128], index: 1, kind: input, shape index: {}]   ;;  %s169_s0 = inlined_call_operand.vmem [shape: f32[2,32], index: 0, kind: input, shape index: {}]   ;;  %s170_s2 = inlined_call_operand.vmem [shape: f32[1,128], index: 2, kind: input, shape index: {}]   ;;  %s171_s3 = inlined_call_operand.vmem [shape: f32[2,128], index: 3, kind: output, shape index: {}]  }
   0x1   :  { %112 = vmatprep.subr.mxu0 %v125_v0  ;;  %v18_v1 = vld [vmem:[%s168_s1 + $0x18] sm:$0xff]  ;;  %v17_v2 = vld [vmem:[%s168_s1 + $0x10] sm:$0xff]  ;;  %120 = vmatprep.mubr.msk.f32.mxu0 %vm126_vm0, %v125_v0  ;;  %v16_v3 = vld [vmem:[%s168_s1 + $0x8] sm:$0xff] }
   0x2   :  { %113 = vmatpush3.msra.mxu0 %v18_v1  ;;  %v15_v4 = vld [vmem:[%s168_s1] sm:$0xff] }
   0x3   :  { %114 = vmatprep.subr.mxu0 %v125_v0  ;;  %v14_v5 = vld [vmem:[%s169_s0] sm:$0x3] }
   0x4   :  { %115 = vmatpush3.msra.mxu0 %v17_v2  ;;  %v105_v6 = vld [vmem:[%s170_s2] ss:$0 sm:$0xff] }
   0x5   :  { %116 = vmatprep.subr.mxu0 %v125_v0 }
   0x6   :  { %117 = vmatpush3.msra.mxu0 %v16_v3 }
   0x7   :  { %118 = vmatprep.subr.mxu0 %v125_v0 }
   0x8   :  { %119 = vmatpush3.msra.mxu0 %v15_v4 }
   0x9   :  { %121 = vmatmul.mubr.msk.f32.vlgmr.msra.gmra.mxu0 %vm26_vm1, %v14_v5 }
  0xc9   :  { %v96_v7 = vpop.f32.mrf.mxu0 }
  0xca   :  { %v97_v8 = vadd.f32 %v105_v6, %v96_v7 }
  0xcb   :  { %v122_v9 = vpop.f32.mrf.mxu0 }
  0xcc   :  { %100 = vst [vmem:[%s171_s3] sm:$0x3] %v97_v8 }

</bundles_post_ra>
